<compile_context>
chip_gen: v7x
topology: tpu7x:2x2x1
jax: 0.10.0
libtpu: 0.0.40
codegen_flags: <defaults>
</compile_context>

<pallas_src>
import jax
import jax.numpy as jnp
from jax.experimental import pallas as pl
from jax.experimental.pallas import tpu as pltpu


def _round_up(x, m):
    return ((x + m - 1) // m) * m


def make_critic_kernel(layer_meta):
    """layer_meta: tuple of (row_offset, out_dim, in_dim) per layer.

    The last entry is the scalar head; its weight is stored as a COLUMN
    (H_last rows x 1 col) in the weight slab so the head runs on the VPU/XLU.
    """
    n_layers = len(layer_meta)

    def kernel(x_ref, w_ref, b_ref, o_ref):
        mm_dtype = w_ref.dtype                       # f32 or bf16 MXU operands
        h = x_ref[...]                               # (f_in, TB), batch on lanes
        for li in range(n_layers - 1):
            r0, out_d, in_d = layer_meta[li]
            w = w_ref[r0:r0 + out_d, 0:in_d]         # (out, in) static slab slice
            b = b_ref[0:out_d, li:li + 1]            # (out, 1) f32
            h = jnp.dot(w, h.astype(mm_dtype),
                        preferred_element_type=jnp.float32) + b
            h = jnp.maximum(h, 0.0)                  # ReLU in f32 (v5e: no bf16 VPU)
        # Scalar head: elementwise multiply + sublane reduce -> lane-dense row.
        r0, out_d, _ = layer_meta[-1]
        w_col = w_ref[r0:r0 + out_d, 0:1].astype(jnp.float32)   # (H_last, 1)
        b_out = b_ref[0:1, n_layers - 1:n_layers]                # (1, 1)
        o_ref[...] = (jnp.sum(h * w_col, axis=0, keepdims=True)
                      + b_out).astype(o_ref.dtype)

    return kernel


def _pack_params(params):
    """Pack all weights/biases into two small slabs + static layout metadata.

    w_slab rows: [W_0 ; W_1 ; ... ; w_out(as column)], each block row-padded to
    a multiple of 8 sublanes, width = max fan-in.  b_slab: one column per layer
    (last column holds the scalar head bias).  Collapses 2*L+2 tiny prologue
    DMAs into 2 resident ones.
    """
    hidden = params["hidden"]
    w_out = params["w_out"]                # (H_last,)
    b_out = params["b_out"]                # scalar

    in_dims = [w.shape[1] for w, _ in hidden]
    out_dims = [w.shape[0] for w, _ in hidden]
    h_last = int(w_out.shape[0])
    slab_cols = max(in_dims + [1])

    blocks, meta, row = [], [], 0
    for w, _ in hidden:
        o, i = w.shape
        rpad = _round_up(o, 8)
        blocks.append(jnp.zeros((rpad, slab_cols), jnp.float32).at[:o, :i].set(w))
        meta.append((row, o, i))
        row += rpad
    rpad = _round_up(h_last, 8)
    blocks.append(jnp.zeros((rpad, slab_cols), jnp.float32).at[:h_last, 0].set(w_out))
    meta.append((row, h_last, 1))
    w_slab = jnp.concatenate(blocks, axis=0)

    n_layers = len(hidden) + 1
    b_rows = _round_up(max(out_dims + [1]), 8)
    b_slab = jnp.zeros((b_rows, n_layers), jnp.float32)
    for li, (_, b) in enumerate(hidden):
        b_slab = b_slab.at[:b.shape[0], li].set(b)
    b_slab = b_slab.at[0, n_layers - 1].set(b_out)

    return w_slab, b_slab, tuple(meta)


def _choose_tb(batch, tb_max):
    """Batch tile: multiple of 128 (lane-dense stores), capped at tb_max, and
    chosen so mid/large batches get >=2 grid steps (v7x megacore sharding)."""
    if batch <= 128:
        return 128
    tb = _round_up(pl.cdiv(batch, 2), 128)
    return int(min(tb_max, tb))


def critic_forward(state, action, params, *, tb_max=2048,
                   use_bf16_matmul=False, xla_fallback_below=0):
    """Critic MLP forward pass as a single batch-tiled Pallas kernel.

    state:  (B, state_dims); action: (B, action_dims)
    params: {"hidden": [(W (out,in), b (out,)), ...], "w_out": (H_last,), "b_out": ()}
    Returns (B, 1) f32, matching the PyTorch module.
    """
    state = jnp.asarray(state, jnp.float32)
    action = jnp.asarray(action, jnp.float32)
    B = state.shape[0]

    # For tiny batches the fixed pallas_call cost exceeds the whole network;
    # optional plain-XLA fallback (disabled by default so the demo runs the kernel).
    if xla_fallback_below and B < xla_fallback_below:
        return critic_forward_ref(state, action, params)

    # Fuse the concat once, outside the kernel -> single layer-1 matmul.
    x = jnp.concatenate([state, action], axis=1)       # (B, f_in)
    f_in = x.shape[1]

    w_slab, b_slab, meta = _pack_params(params)

    tb = _choose_tb(B, tb_max)
    num_tiles = int(pl.cdiv(B, tb))
    b_pad = num_tiles * tb

    # Batch-on-lanes: pass x transposed, zero-padded to (f_in, b_pad).
    # Padded lanes compute garbage and are sliced off after the call.
    compute_dtype = jnp.bfloat16 if use_bf16_matmul else jnp.float32
    xt = jnp.zeros((f_in, b_pad), jnp.float32).at[:, :B].set(x.T)
    xt = xt.astype(compute_dtype)
    w_in = w_slab.astype(compute_dtype)

    in_specs = [
        pl.BlockSpec((f_in, tb), lambda i: (0, i)),       # activations (tiled)
        pl.BlockSpec(w_slab.shape, lambda i: (0, 0)),     # weight slab (resident)
        pl.BlockSpec(b_slab.shape, lambda i: (0, 0)),     # bias slab (resident)
    ]
    out_spec = pl.BlockSpec((1, tb), lambda i: (0, i))    # lane-dense output row

    # Advisory cost estimate for XLA scheduling.
    itemsize = jnp.dtype(compute_dtype).itemsize
    flops = 0
    for (_, out_d, in_d) in meta[:-1]:
        flops += 2 * b_pad * out_d * in_d
    flops += 2 * b_pad * meta[-1][1]
    bytes_accessed = (itemsize * (b_pad * f_in + w_in.size)
                      + 4 * (b_slab.size + b_pad))

    out_row = pl.pallas_call(
        make_critic_kernel(meta),
        out_shape=jax.ShapeDtypeStruct((1, b_pad), jnp.float32),
        grid=(num_tiles,),
        in_specs=in_specs,
        out_specs=out_spec,
        compiler_params=pltpu.CompilerParams(
            dimension_semantics=("parallel",)),
        cost_estimate=pl.CostEstimate(
            flops=int(flops), transcendentals=0,
            bytes_accessed=int(bytes_accessed)),
    )(xt, w_in, b_slab)

    return out_row[0, :B, None]                            # (B, 1)


def init_params(key, state_dims, action_dims, hidden_dims):
    """Synthetic parameters mirroring nn.Linear defaults.

    Weights are kept in PyTorch layout (out_features, in_features); the kernel
    consumes that layout directly (batch-on-lanes => h_next = W @ h + b).
    """
    dims = [state_dims + action_dims] + list(hidden_dims) + [1]
    keys = jax.random.split(key, 2 * (len(dims) - 1))

    hidden = []
    for li in range(len(hidden_dims)):
        fan_in = dims[li]
        bound = 1.0 / float(fan_in) ** 0.5
        w = jax.random.uniform(keys[2 * li], (dims[li + 1], dims[li]),
                               jnp.float32, -bound, bound)
        b = jax.random.uniform(keys[2 * li + 1], (dims[li + 1],),
                               jnp.float32, -bound, bound)
        hidden.append((w, b))

    li = len(hidden_dims)
    fan_in = dims[li]
    bound = 1.0 / float(fan_in) ** 0.5
    w_out = jax.random.uniform(keys[2 * li], (dims[li],), jnp.float32, -bound, bound)
    b_out = jax.random.uniform(keys[2 * li + 1], (), jnp.float32, -bound, bound)

    return {"hidden": hidden, "w_out": w_out, "b_out": b_out}


def critic_forward_ref(state, action, params):
    """Pure-JAX reference for correctness check."""
    x = jnp.concatenate([state.astype(jnp.float32),
                         action.astype(jnp.float32)], axis=1)
    h = x
    for w, b in params["hidden"]:
        h = jnp.maximum(h @ w.T + b[None, :], 0.0)
    return h @ params["w_out"][:, None] + params["b_out"]


if __name__ == "__main__":
    # Small shapes consistent with the module: state=12, action=4, hidden=[32,32]
    state_dims, action_dims, hidden_dims = 12, 4, [32, 32]
    batch = 8

    key = jax.random.PRNGKey(0)
    k_param, k_state, k_action = jax.random.split(key, 3)

    params = init_params(k_param, state_dims, action_dims, hidden_dims)
    state = jax.random.normal(k_state, (batch, state_dims), jnp.float32)
    action = jax.random.normal(k_action, (batch, action_dims), jnp.float32)

    ref = critic_forward_ref(state, action, params)

    # f32 path: exact agreement with the reference.
    out = jax.block_until_ready(critic_forward(state, action, params))
    assert out.shape == (batch, 1)
    assert jnp.allclose(out, ref, atol=1e-5, rtol=1e-5)

    # bf16 MXU-operand path (halves HBM/VMEM bytes on v6e/v7x; f32 accumulate,
    # f32 VPU work) -- looser tolerance per bf16 mantissa.
    out_bf16 = jax.block_until_ready(
        critic_forward(state, action, params, use_bf16_matmul=True))
    assert jnp.allclose(out_bf16, ref, atol=1e-1, rtol=1e-1)

    # TODO(synk): the Adam optimizer and save()/load() of the PyTorch module are
    # training & checkpoint I/O concerns and are not part of the forward pass.

    print("KERNEL_OK")
</pallas_src>

<mosaic_0001>
module attributes {stable_mosaic.version = 11 : i64} {
  func.func @kernel(%arg0: i32, %arg1: memref<16x128xf32, #tpu.memory_space<vmem>>, %arg2: memref<96x32xf32, #tpu.memory_space<vmem>>, %arg3: memref<32x3xf32, #tpu.memory_space<vmem>>, %arg4: memref<1x128xf32, #tpu.memory_space<vmem>>) attributes {dimension_semantics = [#tpu.dimension_semantics<parallel>], iteration_bounds = array<i64: 1>, scalar_prefetch = 0 : i64, scratch_operands = 0 : i64, tpu.core_type = #tpu.core_type<tc>, window_params = [{transform_indices = @transform_0, window_bounds = array<i64: 16, 128>}, {pipeline_mode = #tpu.pipeline_mode<synchronous>, transform_indices = @transform_1, window_bounds = array<i64: 96, 32>}, {pipeline_mode = #tpu.pipeline_mode<synchronous>, transform_indices = @transform_2, window_bounds = array<i64: 32, 3>}, {transform_indices = @transform_3, window_bounds = array<i64: 1, 128>}]} {
    %c0 = arith.constant 0 : index
    %c0_0 = arith.constant 0 : index
    %0 = vector.load %arg1[%c0, %c0_0] : memref<16x128xf32, #tpu.memory_space<vmem>>, vector<16x128xf32>
    %c0_1 = arith.constant 0 : index
    %c0_2 = arith.constant 0 : index
    %1 = vector.load %arg2[%c0_1, %c0_2] : memref<96x32xf32, #tpu.memory_space<vmem>>, vector<32x16xf32>
    %c0_3 = arith.constant 0 : index
    %c0_4 = arith.constant 0 : index
    %2 = vector.load %arg3[%c0_3, %c0_4] : memref<32x3xf32, #tpu.memory_space<vmem>>, vector<32x1xf32>
    %cst = arith.constant dense<0.000000e+00> : vector<32x128xf32>
    %3 = tpu.matmul %1, %0, %cst {dimension_numbers = #tpu.dot_dimension_numbers<[1], [0], [0], [1], [0, 0, 1, 1], [], []>} : vector<32x16xf32>, vector<16x128xf32>, vector<32x128xf32> -> vector<32x128xf32>
    %4 = vector.broadcast %2 : vector<32x1xf32> to vector<32x128xf32>
    %5 = arith.addf %3, %4 : vector<32x128xf32>
    %cst_5 = arith.constant 0.000000e+00 : f32
    %6 = vector.broadcast %cst_5 : f32 to vector<32x128xf32>
    %7 = arith.maximumf %5, %6 : vector<32x128xf32>
    %c32 = arith.constant 32 : index
    %c0_6 = arith.constant 0 : index
    %8 = vector.load %arg2[%c32, %c0_6] : memref<96x32xf32, #tpu.memory_space<vmem>>, vector<32x32xf32>
    %c0_7 = arith.constant 0 : index
    %c1 = arith.constant 1 : index
    %9 = vector.load %arg3[%c0_7, %c1] : memref<32x3xf32, #tpu.memory_space<vmem>>, vector<32x1xf32>
    %cst_8 = arith.constant dense<0.000000e+00> : vector<32x128xf32>
    %10 = tpu.matmul %8, %7, %cst_8 {dimension_numbers = #tpu.dot_dimension_numbers<[1], [0], [0], [1], [0, 0, 1, 1], [], []>} : vector<32x32xf32>, vector<32x128xf32>, vector<32x128xf32> -> vector<32x128xf32>
    %11 = vector.broadcast %9 : vector<32x1xf32> to vector<32x128xf32>
    %12 = arith.addf %10, %11 : vector<32x128xf32>
    %cst_9 = arith.constant 0.000000e+00 : f32
    %13 = vector.broadcast %cst_9 : f32 to vector<32x128xf32>
    %14 = arith.maximumf %12, %13 : vector<32x128xf32>
    %c64 = arith.constant 64 : index
    %c0_10 = arith.constant 0 : index
    %15 = vector.load %arg2[%c64, %c0_10] : memref<96x32xf32, #tpu.memory_space<vmem>>, vector<32x1xf32>
    %c0_11 = arith.constant 0 : index
    %c2 = arith.constant 2 : index
    %16 = vector.load %arg3[%c0_11, %c2] : memref<32x3xf32, #tpu.memory_space<vmem>>, vector<1x1xf32>
    %17 = vector.broadcast %15 : vector<32x1xf32> to vector<32x128xf32>
    %18 = arith.mulf %14, %17 : vector<32x128xf32>
    %cst_12 = arith.constant dense<0.000000e+00> : vector<128xf32>
    %19 = vector.multi_reduction <add>, %18, %cst_12 [0] : vector<32x128xf32> to vector<128xf32>
    %20 = vector.shape_cast %19 : vector<128xf32> to vector<1x128xf32>
    %21 = vector.broadcast %16 : vector<1x1xf32> to vector<1x128xf32>
    %22 = arith.addf %20, %21 : vector<1x128xf32>
    %c0_13 = arith.constant 0 : index
    %c0_14 = arith.constant 0 : index
    %23 = vector.load %arg4[%c0_13, %c0_14] : memref<1x128xf32, #tpu.memory_space<vmem>>, vector<1x128xf32>
    tpu.vector_store %arg4[%c0_13, %c0_14], %22 {strides = array<i32>} : memref<1x128xf32, #tpu.memory_space<vmem>>, vector<1x128xf32>,
    return
  }
  func.func @transform_0(%arg0: i32) -> (i32, i32) {
    %c0_i32 = arith.constant 0 : i32
    %c0_i32_0 = arith.constant 0 : i32
    return %c0_i32, %arg0 : i32, i32
  }
  func.func @transform_1(%arg0: i32) -> (i32, i32) {
    %c0_i32 = arith.constant 0 : i32
    %c0_i32_0 = arith.constant 0 : i32
    %c0_i32_1 = arith.constant 0 : i32
    return %c0_i32, %c0_i32_0 : i32, i32
  }
  func.func @transform_2(%arg0: i32) -> (i32, i32) {
    %c0_i32 = arith.constant 0 : i32
    %c0_i32_0 = arith.constant 0 : i32
    %c0_i32_1 = arith.constant 0 : i32
    return %c0_i32, %c0_i32_0 : i32, i32
  }
  func.func @transform_3(%arg0: i32) -> (i32, i32) {
    %c0_i32 = arith.constant 0 : i32
    %c0_i32_0 = arith.constant 0 : i32
    return %c0_i32, %arg0 : i32, i32
  }
}

</mosaic_0001>

<bundles_post_ra>
// kernel: tpu_custom_call.1
= control target key start
LH: loop header
LB: loop body
LE: loop exit
PB: predicated region body
PF: predicated region fallthrough
CT: control target
= control target key end

     0   :  { %vm45_vm0 = vcmask 130048   ;;  %v421_v4 = vmov 0   ;;  %s522_s0 = inlined_call_operand.vmem [shape: f32[16,128], index: 0, kind: input, shape index: {}]   ;;  %s523_s1 = inlined_call_operand.vmem [shape: f32[96,32], index: 1, kind: input, shape index: {}]   ;;  %s524_s2 = inlined_call_operand.vmem [shape: f32[32,3], index: 2, kind: input, shape index: {}]   ;;  %s525_s3 = inlined_call_operand.hbm [shape: f32[1,128], index: 3, kind: output, shape index: {}]  }
   0x1   :  { %v15_v0 = vld [vmem:[%s522_s0] sm:$0xff]  ;;  %v16_v1 = vld [vmem:[%s522_s0 + $0x8] sm:$0xff]  ;;  %390 = vset.pattern.permute.xlu0 %v421_v4  ;;  %391 = vset.pattern.permute.xlu1 %v421_v4  ;;  %v23_v6 = vld [vmem:[%s524_s2 + $0x10] sm:$0xff] }
   0x2   :  { %v17_v2 = vld [vmem:[%s523_s1] sm:$0xff]  ;;  %v374_v3 = vpack.c.bf16 %v16_v1, %v15_v0 }
   0x3   :  { %354 = vmatprep.mubr.msk.f32.mxu0 %vm45_vm0, %v17_v2  ;;  %v21_v5 = vld [vmem:[%s524_s2] sm:$0xff] }
   0x4   :  { %375 = vmatprep.subr.bf16.mxu0 %v374_v3  ;;  %27 = vperm.xlu0 %390, %v21_v5  }
   0x5   :  { %8 = vsyncpa [#allocation3], 0  ;;  %377 = vmatpush3.bf16.msra.mxu0 %v374_v3  ;;  %v18_v7 = vld [vmem:[%s523_s1 + $0x8] sm:$0xff]  ;;  %37 = vperm.xlu1 %391, %v23_v6   ;;  %v19_v9 = vld [vmem:[%s523_s1 + $0x10] sm:$0xff]  ;;  %vm167_vm1 = vcmask 261120   ;;  %v422_v13 = vmov 1  }
   0x6   :  { %v22_v8 = vld [vmem:[%s524_s2 + $0x8] sm:$0xff]  ;;  %v24_v10 = vld [vmem:[%s524_s2 + $0x18] sm:$0xff]  ;;  %v147_v12 = vld [vmem:[%s523_s1 + $0x20] sm:$0xff]  ;;  %v423_v18 = vmov 2  }
   0x7   :  { %v20_v11 = vld [vmem:[%s523_s1 + $0x18] sm:$0xff]  ;;  %368 = vmatprep.mubr.msk.f32.mxu1 %vm167_vm1, %v147_v12  ;;  %v269_v14 = vld [vmem:[%s523_s1 + $0x40] sm:$0xff]  ;;  %v270_v15 = vld [vmem:[%s523_s1 + $0x48] sm:$0xff] }
   0x8   :  { %355 = vmatmul.mubr.msk.f32.vlgmr.msra.gmra.mrb[0].mxu0 %vm45_vm0, %v18_v7  ;;  %32 = vperm.xlu0 %390, %v22_v8   ;;  %v271_v16 = vld [vmem:[%s523_s1 + $0x50] sm:$0xff]  ;;  %v273_v17 = vld [vmem:[%s524_s2] sm:$0x1]  ;;  %v272_v19 = vld [vmem:[%s523_s1 + $0x58] sm:$0xff] }
   0x9   :  { %357 = vmatprep.mubr.msk.f32.mxu0 %vm45_vm0, %v19_v9  ;;  %42 = vperm.xlu1 %391, %v24_v10   ;;  %v148_v38 = vld [vmem:[%s523_s1 + $0x28] sm:$0xff]  ;;  %v149_v39 = vld [vmem:[%s523_s1 + $0x30] sm:$0xff]  ;;  %v150_v40 = vld [vmem:[%s523_s1 + $0x38] sm:$0xff]  ;;  %s424_s1 = smov [#allocation2]  }
   0xa   :  { %s320_s21 = sshll.u32 %s424_s1, 4  ;;  %s321_s21 = int_to_ptr.vmem [resolvable:$true] %s320_s21 }
   0xb   :  { %s397_s0 = scalar_lea.vmem %s321_s21, 16  ;;  %s401_s22 = scalar_lea.vmem %s321_s21, 32 }
   0xc   :  { %358 = vmatmul.mubr.msk.f32.gmra.mrb[2].mxu0 %vm45_vm0, %v20_v11  ;;  %392 = vset.pattern.permute.xlu0 %v422_v13  ;;  %p398_p0 = scmp.ne.s32.totalorder %s321_s21, %s397_s0  ;;  %p402_p1 = scmp.lt.s32.totalorder %s321_s21, %s321_s21 }
   0xd   :  { %393 = vset.pattern.permute.xlu1 %v422_v13  ;;  %152 = vperm.xlu0 %392, %v21_v5   ;;  %p403_p2 = scmp.lt.s32.totalorder %s401_s22, %s397_s0 }
   0xe   :  { %156 = vperm.xlu1 %393, %v22_v8  }
   0xf   :  { %p404_p3 = por %p403_p2, %p402_p1 }
  0x11   :  { %164 = vperm.xlu0 %392, %v24_v10   ;;  %p405_p4 = pnand %p404_p3, %p398_p0 }
  0x12   :  { %160 = vperm.xlu1 %393, %v23_v6  }
  0x15   :  { %395 = vset.pattern.permute.xlu0 %v421_v4 }
  0x16   :  { %394 = vset.pattern.permute.xlu1 %v421_v4  ;;  %281 = vperm.xlu0 %395, %v270_v15  }
  0x17   :  { %276 = vperm.xlu1 %394, %v269_v14  }
  0x1a   :  { %396 = vset.pattern.permute.xlu0 %v423_v18 }
  0x1b   :  { %286 = vperm.xlu1 %394, %v271_v16   ;;  %309 = vperm.xlu0 %396, %v273_v17  }
  0x1f   :  { %291 = vperm.xlu1 %394, %v272_v19  }
  0x83   :  { %v28_v20 = vpop.permute.xlu0 %27 }
  0x84   :  { %v38_v21 = vpop.permute.xlu1 %37 }
  0x87   :  { %v33_v22 = vpop.permute.xlu0 %32 }
  0x88   :  { %v43_v28 = vpop.permute.xlu1 %42 }
  0x8c   :  { %v153_v42 = vpop.permute.xlu0 %152 }
  0x8d   :  { %v157_v41 = vpop.permute.xlu1 %156 }
  0x90   :  { %v165_v44 = vpop.permute.xlu0 %164 }
  0x91   :  { %v161_v43 = vpop.permute.xlu1 %160 }
  0x95   :  { %v282_v50 = vpop.permute.xlu0 %281 }
  0x96   :  { %v277_v45 = vpop.permute.xlu1 %276 }
  0x9a   :  { %v287_v54 = vpop.permute.xlu1 %286  ;;  %v310_v9 = vpop.permute.xlu0 %309 }
  0x9e   :  { %v292_v0 = vpop.permute.xlu1 %291 }
  0xdb   :  { %v356_v23 = vpop.f32.mrb[0].mxu0 }
  0xdc   :  { %v130_v24 = vadd.f32 %v356_v23, %v33_v22  ;;  %v124_v25 = vpop.f32.mrb[1].mxu0 }
  0xdd   :  { %v125_v26 = vadd.f32 %v124_v25, %v28_v20 }
  0xde   :  { %v144_v27 = vmax.f32 %v130_v24, 0.0 }
  0xdf   :  { %v143_v29 = vmax.f32 %v125_v26, 0.0  ;;  %v359_v30 = vpop.f32.mrb[2].mxu0 }
  0xe0   :  { %v140_v31 = vadd.f32 %v359_v30, %v43_v28  ;;  %v134_v32 = vpop.f32.mrb[3].mxu0 }
  0xe1   :  { %v135_v33 = vadd.f32 %v134_v32, %v38_v21  ;;  %v378_v34 = vpack.c.bf16 %v144_v27, %v143_v29 }
  0xe2   :  { %v146_v35 = vmax.f32 %v140_v31, 0.0 }
  0xe3   :  { %v145_v36 = vmax.f32 %v135_v33, 0.0  ;;  %379 = vmatprep.subr.bf16.mxu1 %v378_v34 }
  0xe4   :  { %381 = vmatpush3.bf16.msra.mxu1 %v378_v34 }
  0xe5   :  { %v382_v37 = vpack.c.bf16 %v146_v35, %v145_v36 }
  0xe7   :  { %383 = vmatprep.subr.bf16.mxu1 %v382_v37 }
  0xe8   :  { %385 = vmatpush3.bf16.msra.mxu1 %v382_v37 }
  0xeb   :  { %369 = vmatmul.mubr.msk.f32.vlgmr.msra.gmra.mrb[0].mxu1 %vm167_vm1, %v148_v38 }
  0xec   :  { %371 = vmatprep.mubr.msk.f32.mxu1 %vm167_vm1, %v149_v39 }
  0xef   :  { %372 = vmatmul.mubr.msk.f32.gmra.mrb[2].mxu1 %vm167_vm1, %v150_v40 }
 0x1be   :  { %v370_v46 = vpop.f32.mrb[0].mxu1 }
 0x1bf   :  { %v252_v47 = vadd.f32 %v370_v46, %v157_v41  ;;  %v246_v48 = vpop.f32.mrb[1].mxu1 }
 0x1c0   :  { %v247_v49 = vadd.f32 %v246_v48, %v153_v42 }
 0x1c1   :  { %v266_v51 = vmax.f32 %v252_v47, 0.0 }
 0x1c2   :  { %v265_v52 = vmax.f32 %v247_v49, 0.0  ;;  %v373_v53 = vpop.f32.mrb[2].mxu1 }
 0x1c3   :  { %v295_v55 = vmul.f32 %v282_v50, %v266_v51  ;;  %v262_v56 = vadd.f32 %v373_v53, %v165_v44  ;;  %v256_v57 = vpop.f32.mrb[3].mxu1 }
 0x1c4   :  { %v294_v58 = vmul.f32 %v277_v45, %v265_v52  ;;  %v257_v59 = vadd.f32 %v256_v57, %v161_v43 }
 0x1c5   :  { %v268_v61 = vmax.f32 %v262_v56, 0.0 }
 0x1c6   :  { %v298_v60 = vadd.f32 %v295_v55, %v294_v58  ;;  %v267_v62 = vmax.f32 %v257_v59, 0.0 }
 0x1c7   :  { %v297_v1 = vmul.f32 %v292_v0, %v268_v61 }
 0x1c8   :  { %v296_v63 = vmul.f32 %v287_v54, %v267_v62 }
 0x1ca   :  { %v299_v2 = vadd.f32 %v298_v60, %v296_v63 }
 0x1cc   :  { %v300_v3 = vadd.f32 %v299_v2, %v297_v1 }
 0x1ce   :  { %v301_v4 = vrot.slane %v300_v3, 4 }
 0x1d0   :  { %v302_v5 = vadd.f32 %v301_v4, %v300_v3 }
 0x1d2   :  { %v303_v6 = vrot.slane %v302_v5, 2 }
 0x1d4   :  { %v304_v7 = vadd.f32 %v303_v6, %v302_v5 }
 0x1d6   :  { %v305_v8 = vrot.slane %v304_v7, 1 }
 0x1d8   :  { %v306_v10 = vadd.f32 %v305_v8, %v304_v7 }
 0x1da   :  { %v312_v11 = vadd.f32 %v310_v9, %v306_v10 }
 0x1dc   :  { %313 = vst [vmem:[#allocation2] sm:$0x1] %v312_v11 }
 0x1dd   :  { %408 = shalt.err (!%p405_p4)
}
 0x1de   :  { %s409_s25 = scalar_lea.hbm %s525_s3, 16 }
 0x1df   :  { %p410_p5 = scmp.ne.s32.totalorder %s525_s3, %s409_s25  ;;  %p413_p6 = scmp.lt.u32.totalorder %s409_s25, %s525_s3 }
 0x1e1   :  { %p415_p7 = pnand %p413_p6, %p410_p5 }
 0x1e3   :  { %418 = shalt.err (!%p415_p7)
}
 0x1e4   :  { %323 = dma.vmem_to_hbm [thread:$0]  %s321_s21, 16, %s525_s3, [#allocation3]  }
 0x1e5   :  { %419 = dma.done.wait [#allocation3], 16  }
 0x1e6   :  { %420 = vsyncadd [#allocation3], 4294967280 }
 0x1e7   :  { %327 = vsyncpa [#allocation3], 1 }

</bundles_post_ra>
